<compile_context>
chip_gen: v6e
topology: v6e:2x2x1
jax: 0.10.0
libtpu: 0.0.40
codegen_flags: <defaults>
</compile_context>

<pallas_src>
import functools

import jax
import jax.numpy as jnp
from jax import lax
from jax.experimental import pallas as pl
from jax.experimental.pallas import tpu as pltpu

EPS = 1e-12  # F.normalize default eps


# ----------------------------------------------------------------------------
# kernel
# ----------------------------------------------------------------------------
def _normlinear_kernel(*refs, scale_out: bool):
    # scale_out=True :  (x_ref, w_ref, inv_ref, o_ref, acc_ref)
    # scale_out=False:  (x_ref, w_ref,          o_ref, acc_ref)
    if scale_out:
        x_ref, w_ref, inv_ref, o_ref, acc_ref = refs
    else:
        x_ref, w_ref, o_ref, acc_ref = refs
        inv_ref = None

    k = pl.program_id(2)

    @pl.when(k == 0)
    def _init():
        acc_ref[...] = jnp.zeros_like(acc_ref)

    # x_ref: (tm, tk), w_ref: (tn, tk) -> contract last dims (transposed-RHS
    # MXU matmul, no explicit .T), accumulate in f32.
    acc_ref[...] += lax.dot_general(
        x_ref[...], w_ref[...],
        (((1,), (1,)), ((), ())),
        preferred_element_type=jnp.float32,
    )

    @pl.when(k == pl.num_programs(2) - 1)
    def _finalize():
        acc = acc_ref[...]
        if scale_out:
            acc = acc * inv_ref[...]          # (tm, tn) * (1, tn), once per tile
        o_ref[...] = acc.astype(o_ref.dtype)


# ----------------------------------------------------------------------------
# wrapper helpers
# ----------------------------------------------------------------------------
def _cdiv(a: int, b: int) -> int:
    return -(-a // b)


def _round_up(a: int, b: int) -> int:
    return _cdiv(a, b) * b


def _balanced_tile(size: int, max_tile: int, align: int) -> int:
    """Largest tile <= ~max_tile such that ceil(size/tile) tiles are balanced."""
    max_tile = max(align, _round_up(min(max_tile, size), align))
    n_tiles = _cdiv(size, max_tile)
    return _round_up(_cdiv(size, n_tiles), align)


def _vmem_limit_bytes() -> int:
    try:
        phys = int(pltpu.get_tpu_info().vmem_capacity_bytes)
    except Exception:
        phys = 64 * 1024 * 1024
    # ~96 MiB on v5e/v6e (128 MiB physical), ~48 MiB on v7x (64 MiB physical).
    return min(100 * 1024 * 1024, (phys * 3) // 4)


def _default_tm() -> int:
    try:
        kind = jax.devices()[0].device_kind.lower()
    except Exception:
        kind = ""
    if "v6" in kind:                       # v6e roofline crossover ~650 FLOP/B
        return 1024
    if "v7" in kind or "tpu7" in kind:     # v7x crossover ~310 FLOP/B, 64 MiB VMEM
        return 512
    return 256                             # v5e already at its roofline here


def _fit_tiles(tm, tn, tk, x_bytes, w_bytes, out_bytes, budget):
    """Shrink tile maxima until the double-buffered working set fits VMEM."""
    def est(a, b, c):
        return (2 * a * c * x_bytes          # x double-buffer
                + 2 * b * c * w_bytes        # w double-buffer
                + 2 * a * b * out_bytes      # out double-buffer
                + a * b * 4                  # f32 accumulator scratch
                + 2 * b * 4)                 # inv vector

    while est(tm, tn, tk) > budget and tk > 512:
        tk = max(512, _round_up(tk // 2, 128))
    while est(tm, tn, tk) > budget and tm > 64:
        tm = max(64, _round_up(tm // 2, 8))
    while est(tm, tn, tk) > budget and tn > 128:
        tn = max(128, _round_up(tn // 2, 128))
    return tm, tn, tk


# ----------------------------------------------------------------------------
# public entry point
# ----------------------------------------------------------------------------
def norm_linear(x, weight, *, norm_dim_in: bool = True,
                tm: int | None = None, tn: int = 512, tk: int = 2048):
    """Pallas NormLinear forward.

    x:      (..., dim)
    weight: (dim_out, dim) raw, un-normalized parameter (like nn.Linear.weight)
    returns (..., dim_out)
    """
    dim_out, dim = weight.shape
    lead = x.shape[:-1]
    x2d = x.reshape(-1, dim)
    m = x2d.shape[0]

    # ---- hoisted, tiny f32 norm precompute (fuses with the f32 cast under jit)
    # max(||w||, eps) == sqrt(max(sum(w^2), eps^2))  (sqrt is monotone)
    w32 = weight.astype(jnp.float32)
    if norm_dim_in:
        ssq = jnp.sum(w32 * w32, axis=1)                 # (dim_out,) row norms
    else:
        ssq = jnp.sum(w32 * w32, axis=0)                 # (dim,)     col norms
    inv = lax.rsqrt(jnp.maximum(ssq, EPS * EPS))

    w_mat = weight if weight.dtype == x.dtype else weight.astype(x.dtype)
    if not norm_dim_in:
        # y = x @ (W diag(inv)).T == (x * inv) @ W.T  ->  one fused elementwise
        # pass here; the kernel stays a pure MXU matmul.
        x2d = (x2d.astype(jnp.float32) * inv[None, :]).astype(x.dtype)

    # ---- generation-aware tile / VMEM selection ------------------------------
    if tm is None:
        tm = _default_tm()
    vmem_limit = _vmem_limit_bytes()

    itemsize = jnp.dtype(x.dtype).itemsize
    tm_max = min(tm, _round_up(m, 8))
    tn_max = min(tn, _round_up(dim_out, 128))
    tk_max = min(tk, _round_up(dim, 128))
    tm_max, tn_max, tk_max = _fit_tiles(
        tm_max, tn_max, tk_max, itemsize, itemsize, itemsize,
        int(vmem_limit * 0.9))

    # ---- balanced tiles + padding (lane=128, sublane=8) ----------------------
    tm_eff = _balanced_tile(m, tm_max, 8)
    tn_eff = _balanced_tile(dim_out, tn_max, 128)
    tk_eff = _balanced_tile(dim, tk_max, 128)

    m_pad = _round_up(m, tm_eff)
    n_pad = _round_up(dim_out, tn_eff)
    k_pad = _round_up(dim, tk_eff)

    if (m_pad, k_pad) != (m, dim):
        x_p = jnp.pad(x2d, ((0, m_pad - m), (0, k_pad - dim)))
    else:
        x_p = x2d
    if (n_pad, k_pad) != (dim_out, dim):
        w_p = jnp.pad(w_mat, ((0, n_pad - dim_out), (0, k_pad - dim)))
    else:
        w_p = w_mat

    gm = m_pad // tm_eff
    gn = n_pad // tn_eff
    gk = k_pad // tk_eff

    # ---- adaptive grid order: put the cheaper-to-restream operand inner ------
    # n innermost -> x-tile resident, W re-streamed gm times (bytes ~ gm*dim_out*K)
    # m innermost -> W-tile resident, x re-streamed gn times (bytes ~ gn*m*K)
    m_major = gm * dim_out <= gn * m
    if m_major:
        grid = (gm, gn, gk)
        x_map = lambda i, j, k: (i, k)
        w_map = lambda i, j, k: (j, k)
        o_map = lambda i, j, k: (i, j)
        inv_map = lambda i, j, k: (0, j)
    else:
        grid = (gn, gm, gk)
        x_map = lambda j, i, k: (i, k)
        w_map = lambda j, i, k: (j, k)
        o_map = lambda j, i, k: (i, j)
        inv_map = lambda j, i, k: (0, j)

    in_specs = [
        pl.BlockSpec((tm_eff, tk_eff), x_map),   # x
        pl.BlockSpec((tn_eff, tk_eff), w_map),   # weight
    ]
    operands = [x_p, w_p]
    bytes_accessed = x_p.size * itemsize + w_p.size * itemsize \
        + m_pad * n_pad * itemsize

    if norm_dim_in:
        inv_p = jnp.pad(inv, (0, n_pad - dim_out), constant_values=1.0)
        inv_p = inv_p.reshape(1, n_pad)
        in_specs.append(pl.BlockSpec((1, tn_eff), inv_map))
        operands.append(inv_p)
        bytes_accessed += inv_p.size * 4

    kernel = functools.partial(_normlinear_kernel, scale_out=norm_dim_in)

    out = pl.pallas_call(
        kernel,
        out_shape=jax.ShapeDtypeStruct((m_pad, n_pad), x.dtype),
        grid_spec=pltpu.PrefetchScalarGridSpec(
            num_scalar_prefetch=0,
            grid=grid,
            in_specs=in_specs,
            out_specs=pl.BlockSpec((tm_eff, tn_eff), o_map),
            scratch_shapes=[pltpu.VMEM((tm_eff, tn_eff), jnp.float32)],
        ),
        compiler_params=pltpu.CompilerParams(
            dimension_semantics=("parallel", "parallel", "arbitrary"),
            vmem_limit_bytes=int(vmem_limit),
        ),
        cost_estimate=pl.CostEstimate(
            flops=2 * m_pad * n_pad * k_pad,
            transcendentals=0,
            bytes_accessed=int(bytes_accessed),
        ),
    )(*operands)

    out = out[:m, :dim_out]
    return out.reshape(*lead, dim_out)


# ----------------------------------------------------------------------------
# pure-JAX reference (matches PyTorch F.normalize + Linear, no bias)
# ----------------------------------------------------------------------------
def _reference(x, weight, norm_dim_in=True):
    w = weight.astype(jnp.float32)
    axis = -1 if norm_dim_in else 0
    nrm = jnp.sqrt(jnp.sum(w * w, axis=axis, keepdims=True))
    w_n = w / jnp.maximum(nrm, EPS)
    y = jnp.einsum("...d,od->...o", x.astype(jnp.float32), w_n)
    return y.astype(x.dtype)


if __name__ == "__main__":
    key = jax.random.PRNGKey(0)
    kx, kw = jax.random.split(key)

    batch, seq, dim, dim_out = 2, 8, 32, 64

    x = jax.random.normal(kx, (batch, seq, dim), dtype=jnp.float32)
    # deterministic init, mimicking nn.Linear's kaiming-uniform-ish scale
    bound = 1.0 / (dim ** 0.5)
    weight = jax.random.uniform(
        kw, (dim_out, dim), dtype=jnp.float32, minval=-bound, maxval=bound
    )

    # f32 path (exact vs. reference)
    for ndi in (True, False):
        fn = jax.jit(functools.partial(norm_linear, norm_dim_in=ndi))
        y = jax.block_until_ready(fn(x, weight))
        y_ref = _reference(x, weight, norm_dim_in=ndi)
        assert y.shape == (batch, seq, dim_out), y.shape
        err = float(jnp.max(jnp.abs(y - y_ref)))
        assert jnp.allclose(y, y_ref, atol=1e-5, rtol=1e-5), (ndi, err)

    # bf16 smoke test (bf16 MXU operands, f32 accumulation; loose tolerance
    # accepted per review for the re-quantization of the normalization).
    xb = x.astype(jnp.bfloat16)
    wb = weight.astype(jnp.bfloat16)
    for ndi in (True, False):
        fnb = jax.jit(functools.partial(norm_linear, norm_dim_in=ndi))
        yb = jax.block_until_ready(fnb(xb, wb))
        yb_ref = _reference(xb, wb, norm_dim_in=ndi)
        assert yb.shape == (batch, seq, dim_out), yb.shape
        errb = float(jnp.max(jnp.abs(yb.astype(jnp.float32)
                                     - yb_ref.astype(jnp.float32))))
        assert errb < 1e-1, (ndi, errb)

    print("KERNEL_OK")
</pallas_src>

<mosaic_0001>
module attributes {stable_mosaic.version = 11 : i64} {
  func.func @_normlinear_kernel(%arg0: i32, %arg1: i32, %arg2: i32, %arg3: memref<16x128xf32, #tpu.memory_space<vmem>>, %arg4: memref<128x128xf32, #tpu.memory_space<vmem>>, %arg5: memref<1x128xf32, #tpu.memory_space<vmem>>, %arg6: memref<16x128xf32, #tpu.memory_space<vmem>>, %arg7: memref<16x128xf32, #tpu.memory_space<vmem>>) attributes {dimension_semantics = [#tpu.dimension_semantics<parallel>, #tpu.dimension_semantics<parallel>, #tpu.dimension_semantics<arbitrary>], iteration_bounds = array<i64: 1, 1, 1>, scalar_prefetch = 0 : i64, scratch_operands = 1 : i64, tpu.core_type = #tpu.core_type<tc>, window_params = [{transform_indices = @transform_0, window_bounds = array<i64: 16, 128>}, {transform_indices = @transform_1, window_bounds = array<i64: 128, 128>}, {transform_indices = @transform_2, window_bounds = array<i64: 1, 128>}, {transform_indices = @transform_3, window_bounds = array<i64: 16, 128>}]} {
    %c0_i32 = arith.constant 0 : i32
    %0 = arith.cmpi eq, %arg2, %c0_i32 : i32
    %1 = arith.extui %0 : i1 to i32
    %c0_i32_0 = arith.constant 0 : i32
    %2 = arith.cmpi ne, %1, %c0_i32_0 : i32
    scf.if %2 {
      %cst_10 = arith.constant 0.000000e+00 : f32
      %12 = vector.broadcast %cst_10 : f32 to vector<16x128xf32>
      %c0_11 = arith.constant 0 : index
      %c0_12 = arith.constant 0 : index
      %13 = vector.load %arg7[%c0_11, %c0_12] : memref<16x128xf32, #tpu.memory_space<vmem>>, vector<16x128xf32>
      tpu.vector_store %arg7[%c0_11, %c0_12], %12 {strides = array<i32>} : memref<16x128xf32, #tpu.memory_space<vmem>>, vector<16x128xf32>,
    } else {
    }
    %c0 = arith.constant 0 : index
    %c0_1 = arith.constant 0 : index
    %3 = vector.load %arg7[%c0, %c0_1] : memref<16x128xf32, #tpu.memory_space<vmem>>, vector<16x128xf32>
    %c0_2 = arith.constant 0 : index
    %c0_3 = arith.constant 0 : index
    %4 = vector.load %arg3[%c0_2, %c0_3] : memref<16x128xf32, #tpu.memory_space<vmem>>, vector<16x128xf32>
    %c0_4 = arith.constant 0 : index
    %c0_5 = arith.constant 0 : index
    %5 = vector.load %arg4[%c0_4, %c0_5] : memref<128x128xf32, #tpu.memory_space<vmem>>, vector<128x128xf32>
    %cst = arith.constant dense<0.000000e+00> : vector<16x128xf32>
    %6 = tpu.matmul %4, %5, %cst {dimension_numbers = #tpu.dot_dimension_numbers<[1], [1], [0], [0], [0, 0, 1, 0], [], []>} : vector<16x128xf32>, vector<128x128xf32>, vector<16x128xf32> -> vector<16x128xf32>
    %7 = arith.addf %3, %6 : vector<16x128xf32>
    %c0_6 = arith.constant 0 : index
    %c0_7 = arith.constant 0 : index
    %8 = vector.load %arg7[%c0_6, %c0_7] : memref<16x128xf32, #tpu.memory_space<vmem>>, vector<16x128xf32>
    tpu.vector_store %arg7[%c0_6, %c0_7], %7 {strides = array<i32>} : memref<16x128xf32, #tpu.memory_space<vmem>>, vector<16x128xf32>,
    %c0_i32_8 = arith.constant 0 : i32
    %9 = arith.cmpi eq, %arg2, %c0_i32_8 : i32
    %10 = arith.extui %9 : i1 to i32
    %c0_i32_9 = arith.constant 0 : i32
    %11 = arith.cmpi ne, %10, %c0_i32_9 : i32
    scf.if %11 {
      %c0_10 = arith.constant 0 : index
      %c0_11 = arith.constant 0 : index
      %12 = vector.load %arg7[%c0_10, %c0_11] : memref<16x128xf32, #tpu.memory_space<vmem>>, vector<16x128xf32>
      %c0_12 = arith.constant 0 : index
      %c0_13 = arith.constant 0 : index
      %13 = vector.load %arg5[%c0_12, %c0_13] : memref<1x128xf32, #tpu.memory_space<vmem>>, vector<1x128xf32>
      %14 = vector.broadcast %13 : vector<1x128xf32> to vector<16x128xf32>
      %15 = arith.mulf %12, %14 : vector<16x128xf32>
      %c0_14 = arith.constant 0 : index
      %c0_15 = arith.constant 0 : index
      %16 = vector.load %arg6[%c0_14, %c0_15] : memref<16x128xf32, #tpu.memory_space<vmem>>, vector<16x128xf32>
      tpu.vector_store %arg6[%c0_14, %c0_15], %15 {strides = array<i32>} : memref<16x128xf32, #tpu.memory_space<vmem>>, vector<16x128xf32>,
    } else {
    }
    return
  }
  func.func @transform_0(%arg0: i32, %arg1: i32, %arg2: i32) -> (i32, i32) {
    %c0_i32 = arith.constant 0 : i32
    return %arg1, %arg2 : i32, i32
  }
  func.func @transform_1(%arg0: i32, %arg1: i32, %arg2: i32) -> (i32, i32) {
    %c0_i32 = arith.constant 0 : i32
    return %arg0, %arg2 : i32, i32
  }
  func.func @transform_2(%arg0: i32, %arg1: i32, %arg2: i32) -> (i32, i32) {
    %c0_i32 = arith.constant 0 : i32
    %c0_i32_0 = arith.constant 0 : i32
    return %c0_i32, %arg0 : i32, i32
  }
  func.func @transform_3(%arg0: i32, %arg1: i32, %arg2: i32) -> (i32, i32) {
    %c0_i32 = arith.constant 0 : i32
    return %arg1, %arg0 : i32, i32
  }
}

</mosaic_0001>

<bundles_post_ra>
// kernel: norm_linear.1
= control target key start
LH: loop header
LB: loop body
LE: loop exit
PB: predicated region body
PF: predicated region fallthrough
CT: control target
= control target key end

     0   :  { %s276_s1 = inlined_call_operand.vmem [shape: f32[128,128], index: 1, kind: input, shape index: {}]   ;;  %s277_s0 = inlined_call_operand.vmem [shape: f32[16,128], index: 0, kind: input, shape index: {}]   ;;  %s278_s2 = inlined_call_operand.vmem [shape: f32[1,128], index: 2, kind: input, shape index: {}]   ;;  %s279_s3 = inlined_call_operand.vmem [shape: f32[16,128], index: 3, kind: output, shape index: {}]  }
   0x1   :  { %v39_v0 = vld [vmem:[%s276_s1 + $0x78] sm:$0xff]  ;;  %v38_v1 = vld [vmem:[%s276_s1 + $0x70] sm:$0xff]  ;;  %v37_v2 = vld [vmem:[%s276_s1 + $0x68] sm:$0xff] }
   0x2   :  { %158 = vmatprep.subr.mxu0 %v39_v0  ;;  %v22_v3 = vld [vmem:[%s277_s0] sm:$0xff]  ;;  %v35_v5 = vld [vmem:[%s276_s1 + $0x58] sm:$0xff]  ;;  %v34_v6 = vld [vmem:[%s276_s1 + $0x50] sm:$0xff] }
   0x3   :  { %159 = vmatpush3.xpose.msra.mxu0 %v39_v0  ;;  %190 = vmatprep.mubr.f32.mxu0 %v22_v3  ;;  %v36_v4 = vld [vmem:[%s276_s1 + $0x60] sm:$0xff]  ;;  %v33_v7 = vld [vmem:[%s276_s1 + $0x48] sm:$0xff]  ;;  %v31_v9 = vld [vmem:[%s276_s1 + $0x38] sm:$0xff] }
   0x4   :  { %160 = vmatprep.subr.mxu0 %v38_v1  ;;  %v32_v8 = vld [vmem:[%s276_s1 + $0x40] sm:$0xff]  ;;  %v30_v10 = vld [vmem:[%s276_s1 + $0x30] sm:$0xff]  ;;  %v29_v11 = vld [vmem:[%s276_s1 + $0x28] sm:$0xff] }
   0x5   :  { %v28_v12 = vld [vmem:[%s276_s1 + $0x20] sm:$0xff]  ;;  %v27_v13 = vld [vmem:[%s276_s1 + $0x18] sm:$0xff]  ;;  %v26_v14 = vld [vmem:[%s276_s1 + $0x10] sm:$0xff] }
   0x6   :  { %v25_v15 = vld [vmem:[%s276_s1 + $0x8] sm:$0xff]  ;;  %v24_v16 = vld [vmem:[%s276_s1] sm:$0xff] }
   0x7   :  { %161 = vmatpush3.xpose.msra.mxu0 %v38_v1  ;;  %v23_v17 = vld [vmem:[%s277_s0 + $0x8] sm:$0xff]  ;;  %v139_v18 = vld [vmem:[%s278_s2] ss:$0 sm:$0xff] }
   0x8   :  { %162 = vmatprep.subr.mxu0 %v37_v2 }
   0xb   :  { %163 = vmatpush3.xpose.msra.mxu0 %v37_v2 }
   0xc   :  { %164 = vmatprep.subr.mxu0 %v36_v4 }
   0xf   :  { %165 = vmatpush3.xpose.msra.mxu0 %v36_v4 }
  0x10   :  { %166 = vmatprep.subr.mxu0 %v35_v5 }
  0x13   :  { %167 = vmatpush3.xpose.msra.mxu0 %v35_v5 }
  0x14   :  { %168 = vmatprep.subr.mxu0 %v34_v6 }
  0x17   :  { %169 = vmatpush3.xpose.msra.mxu0 %v34_v6 }
  0x18   :  { %170 = vmatprep.subr.mxu0 %v33_v7 }
  0x1b   :  { %171 = vmatpush3.xpose.msra.mxu0 %v33_v7 }
  0x1c   :  { %172 = vmatprep.subr.mxu0 %v32_v8 }
  0x1f   :  { %173 = vmatpush3.xpose.msra.mxu0 %v32_v8 }
  0x20   :  { %174 = vmatprep.subr.mxu0 %v31_v9 }
  0x23   :  { %175 = vmatpush3.xpose.msra.mxu0 %v31_v9 }
  0x24   :  { %176 = vmatprep.subr.mxu0 %v30_v10 }
  0x27   :  { %177 = vmatpush3.xpose.msra.mxu0 %v30_v10 }
  0x28   :  { %178 = vmatprep.subr.mxu0 %v29_v11 }
  0x2b   :  { %179 = vmatpush3.xpose.msra.mxu0 %v29_v11 }
  0x2c   :  { %180 = vmatprep.subr.mxu0 %v28_v12 }
  0x2f   :  { %181 = vmatpush3.xpose.msra.mxu0 %v28_v12 }
  0x30   :  { %182 = vmatprep.subr.mxu0 %v27_v13 }
  0x33   :  { %183 = vmatpush3.xpose.msra.mxu0 %v27_v13 }
  0x34   :  { %184 = vmatprep.subr.mxu0 %v26_v14 }
  0x37   :  { %185 = vmatpush3.xpose.msra.mxu0 %v26_v14 }
  0x38   :  { %186 = vmatprep.subr.mxu0 %v25_v15 }
  0x3b   :  { %187 = vmatpush3.xpose.msra.mxu0 %v25_v15 }
  0x3c   :  { %188 = vmatprep.subr.mxu0 %v24_v16 }
  0x3f   :  { %189 = vmatpush3.xpose.msra.mxu0 %v24_v16 }
  0x42   :  { %191 = vmatmul.mubr.f32.vlgmr.msra.gmra.mxu0 %v23_v17 }
 0x102   :  { %v192_v19 = vpop.f32.mrf.mxu0 }
 0x103   :  { %v132_v20 = vmul.f32 %v192_v19, %v139_v18 }
 0x104   :  { %v106_v21 = vpop.f32.mrf.mxu0 }
 0x105   :  { %134 = vst [vmem:[%s279_s3 + $0x8] sm:$0xff] %v132_v20  ;;  %v131_v22 = vmul.f32 %v139_v18, %v106_v21 }
 0x107   :  { %133 = vst [vmem:[%s279_s3] sm:$0xff] %v131_v22 }

</bundles_post_ra>
